<compile_context>
chip_gen: v5e
topology: v5e:2x2
jax: 0.10.0
libtpu: 0.0.40
codegen_flags: <defaults>
</compile_context>

<pallas_src>
import jax
import jax.numpy as jnp
from jax.experimental import pallas as pl
from jax.experimental.pallas import tpu as pltpu


def _round_up(n: int, m: int) -> int:
    return ((n + m - 1) // m) * m


def _mlp_softmax_kernel(x_ref, w1_ref, b1_ref, w2_ref, b2_ref, o_ref):
    # bf16 cast under the DMA (VPU slot, free on a mem-bound kernel); the f32
    # x tile is what actually crosses HBM->VMEM.
    x = x_ref[...].astype(jnp.bfloat16)

    # Hidden layer: x @ W1 (bf16 MXU, f32 accumulate) + b1, ReLU (f32 VPU).
    h = jnp.dot(x, w1_ref[...], preferred_element_type=jnp.float32)
    h = jnp.maximum(h + b1_ref[...], 0.0)

    # Dropout(p=0.1) is identity at inference time.
    # TODO(synk): training-mode dropout would need pltpu.prng_seed/prng_random_bits.

    # Output layer: h @ W2 + b2.  Padded class columns have b2 = -1e30 (f32)
    # so they vanish in the softmax; padded hidden rows of W2 are zero.
    logits = jnp.dot(h.astype(w2_ref.dtype), w2_ref[...],
                     preferred_element_type=jnp.float32) + b2_ref[...]

    # Numerically-stable softmax along the class (lane) axis, all in f32.
    # NOTE: rows are fully independent; any garbage rows in a partial last
    # batch block never get written back (masked store) and are harmless.
    m = jnp.max(logits, axis=-1, keepdims=True)
    e = jnp.exp(logits - m)
    denom = jnp.sum(e, axis=-1, keepdims=True)
    o_ref[...] = (e * pl.reciprocal(denom, approx=True)).astype(o_ref.dtype)


def cifar100_perceptron_forward(x_nchw, w1, b1, w2, b2):
    """Full forward pass of CIFAR100PredictorPerceptron (eval mode).

    x_nchw : (B, C, H, W) float32
    w1     : (D, Hd)  float32   (pre-transposed Linear weight, D = C*H*W)
    b1     : (1, Hd)  float32
    w2     : (Hd, O)  float32
    b2     : (1, O)   float32
    returns: (B, O)   float32 softmax probabilities
    """
    B = x_nchw.shape[0]
    D, Hd = w1.shape
    O = w2.shape[1]

    # Lane-dense padding of hidden and class dims (keep at 128, not 256).
    H_pad = _round_up(Hd, 128)
    O_pad = _round_up(O, 128)

    # torch.flatten(x, 1): contiguous NCHW reshape — metadata-only, no HBM pass.
    # x stays f32; the bf16 cast happens inside the kernel.
    x_flat = x_nchw.reshape(B, D)

    # --- Padded / repacked parameters (bf16 MXU weights, f32 biases). -------
    w1_p = jnp.zeros((D, H_pad), jnp.bfloat16).at[:, :Hd].set(w1.astype(jnp.bfloat16))
    b1_p = jnp.zeros((1, H_pad), jnp.float32).at[:, :Hd].set(b1.reshape(1, Hd))
    w2_p = jnp.zeros((H_pad, O_pad), jnp.bfloat16).at[:Hd, :O].set(w2.astype(jnp.bfloat16))
    # Padded classes get a huge negative f32 bias -> exp() == 0 -> zero probability.
    b2_p = jnp.full((1, O_pad), -1e30, jnp.float32).at[:, :O].set(b2.reshape(1, O))

    # --- Batch tiling -------------------------------------------------------
    # TB_MAX=1024: f32 x double-buffered is 2*TB*D*4 ≈ 8 MiB (D=1024) plus
    # output/weight buffers ≈ 12 MiB total — fits the 32 MiB limit below on
    # v5e/v6e/v7x with headroom (v7x physical VMEM is 64 MiB).
    TB_MAX = 1024
    B8 = _round_up(B, 8)
    if B8 <= 8:
        TB = 8
    else:
        # At least 2 grid steps so both v7x TensorCores get a share of the
        # batch; cap by the VMEM-derived max tile.
        TB = min(TB_MAX, _round_up(pl.cdiv(B8, 2), 8))
    grid = (pl.cdiv(B, TB),)

    cost = pl.CostEstimate(
        flops=2 * B * (D * H_pad + H_pad * O_pad),
        transcendentals=B * O_pad,
        bytes_accessed=(4 * B * D                        # f32 x read
                        + 2 * (D * H_pad + H_pad * O_pad)  # bf16 weights
                        + 4 * (H_pad + O_pad)            # f32 biases
                        + 4 * B * O_pad),                # f32 output
    )

    out = pl.pallas_call(
        _mlp_softmax_kernel,
        out_shape=jax.ShapeDtypeStruct((B, O_pad), jnp.float32),
        grid=grid,
        in_specs=[
            pl.BlockSpec((TB, D), lambda i: (i, 0)),        # x: tiled over batch
            pl.BlockSpec((D, H_pad), lambda i: (0, 0)),     # w1: resident
            pl.BlockSpec((1, H_pad), lambda i: (0, 0)),     # b1: resident
            pl.BlockSpec((H_pad, O_pad), lambda i: (0, 0)), # w2: resident
            pl.BlockSpec((1, O_pad), lambda i: (0, 0)),     # b2: resident
        ],
        out_specs=pl.BlockSpec((TB, O_pad), lambda i: (i, 0)),
        compiler_params=pltpu.CompilerParams(
            dimension_semantics=("parallel",),
            vmem_limit_bytes=32 * 1024 * 1024),
        cost_estimate=cost,
    )(x_flat, w1_p, b1_p, w2_p, b2_p)

    # Drop the padded (zero-probability) class columns.
    return out[:, :O]


def _reference_forward(x_nchw, w1, b1, w2, b2):
    B = x_nchw.shape[0]
    x = x_nchw.reshape(B, -1)
    h = jnp.maximum(x @ w1 + b1, 0.0)
    logits = h @ w2 + b2
    return jax.nn.softmax(logits, axis=1)


if __name__ == "__main__":
    # Small shapes consistent with the module: CIFAR-like NCHW input.
    B, C, H, W = 2, 4, 16, 16
    input_size = C * H * W          # 1024
    hidden_size = 32
    output_size = 100               # CIFAR-100 classes

    key = jax.random.PRNGKey(0)
    kx, k1, kb1, k2, kb2 = jax.random.split(key, 5)

    x = jax.random.normal(kx, (B, C, H, W), dtype=jnp.float32)

    # Deterministic parameter init (roughly matching nn.Linear's uniform init).
    bound1 = 1.0 / (input_size ** 0.5)
    w1 = jax.random.uniform(k1, (input_size, hidden_size), jnp.float32,
                            minval=-bound1, maxval=bound1)
    b1 = jax.random.uniform(kb1, (1, hidden_size), jnp.float32,
                            minval=-bound1, maxval=bound1)
    bound2 = 1.0 / (hidden_size ** 0.5)
    w2 = jax.random.uniform(k2, (hidden_size, output_size), jnp.float32,
                            minval=-bound2, maxval=bound2)
    b2 = jax.random.uniform(kb2, (1, output_size), jnp.float32,
                            minval=-bound2, maxval=bound2)

    out = cifar100_perceptron_forward(x, w1, b1, w2, b2)
    out = jax.block_until_ready(out)

    ref = _reference_forward(x, w1, b1, w2, b2)
    assert out.shape == (B, output_size)
    # bf16 MXU inputs + approx reciprocal -> slightly looser tolerances than f32.
    assert jnp.allclose(out, ref, atol=5e-3, rtol=0.0)
    assert jnp.allclose(jnp.sum(out, axis=1), 1.0, atol=1e-2)

    print("KERNEL_OK")
</pallas_src>

<mosaic_0001>
module attributes {stable_mosaic.version = 11 : i64} {
  func.func @_mlp_softmax_kernel(%arg0: i32, %arg1: memref<8x1024xf32, #tpu.memory_space<vmem>>, %arg2: memref<1024x128xbf16, #tpu.memory_space<vmem>>, %arg3: memref<1x128xf32, #tpu.memory_space<vmem>>, %arg4: memref<128x128xbf16, #tpu.memory_space<vmem>>, %arg5: memref<1x128xf32, #tpu.memory_space<vmem>>, %arg6: memref<8x128xf32, #tpu.memory_space<vmem>>) attributes {dimension_semantics = [#tpu.dimension_semantics<parallel>], iteration_bounds = array<i64: 1>, scalar_prefetch = 0 : i64, scratch_operands = 0 : i64, tpu.core_type = #tpu.core_type<tc>, window_params = [{transform_indices = @transform_0, window_bounds = array<i64: 8, 1024>}, {pipeline_mode = #tpu.pipeline_mode<synchronous>, transform_indices = @transform_1, window_bounds = array<i64: 1024, 128>}, {pipeline_mode = #tpu.pipeline_mode<synchronous>, transform_indices = @transform_2, window_bounds = array<i64: 1, 128>}, {pipeline_mode = #tpu.pipeline_mode<synchronous>, transform_indices = @transform_3, window_bounds = array<i64: 128, 128>}, {pipeline_mode = #tpu.pipeline_mode<synchronous>, transform_indices = @transform_4, window_bounds = array<i64: 1, 128>}, {transform_indices = @transform_5, window_bounds = array<i64: 8, 128>}]} {
    %c0 = arith.constant 0 : index
    %c0_0 = arith.constant 0 : index
    %0 = vector.load %arg1[%c0, %c0_0] : memref<8x1024xf32, #tpu.memory_space<vmem>>, vector<8x1024xf32>
    %1 = arith.truncf %0 : vector<8x1024xf32> to vector<8x1024xbf16>
    %c0_1 = arith.constant 0 : index
    %c0_2 = arith.constant 0 : index
    %2 = vector.load %arg2[%c0_1, %c0_2] : memref<1024x128xbf16, #tpu.memory_space<vmem>>, vector<1024x128xbf16>
    %cst = arith.constant dense<0.000000e+00> : vector<8x128xf32>
    %3 = tpu.matmul %1, %2, %cst {dimension_numbers = #tpu.dot_dimension_numbers<[1], [0], [0], [1], [0, 0, 1, 1], [], []>} : vector<8x1024xbf16>, vector<1024x128xbf16>, vector<8x128xf32> -> vector<8x128xf32>
    %c0_3 = arith.constant 0 : index
    %c0_4 = arith.constant 0 : index
    %4 = vector.load %arg3[%c0_3, %c0_4] : memref<1x128xf32, #tpu.memory_space<vmem>>, vector<1x128xf32>
    %5 = vector.broadcast %4 : vector<1x128xf32> to vector<8x128xf32>
    %6 = arith.addf %3, %5 : vector<8x128xf32>
    %cst_5 = arith.constant 0.000000e+00 : f32
    %7 = vector.broadcast %cst_5 : f32 to vector<8x128xf32>
    %8 = arith.maximumf %6, %7 : vector<8x128xf32>
    %9 = arith.truncf %8 : vector<8x128xf32> to vector<8x128xbf16>
    %c0_6 = arith.constant 0 : index
    %c0_7 = arith.constant 0 : index
    %10 = vector.load %arg4[%c0_6, %c0_7] : memref<128x128xbf16, #tpu.memory_space<vmem>>, vector<128x128xbf16>
    %cst_8 = arith.constant dense<0.000000e+00> : vector<8x128xf32>
    %11 = tpu.matmul %9, %10, %cst_8 {dimension_numbers = #tpu.dot_dimension_numbers<[1], [0], [0], [1], [0, 0, 1, 1], [], []>} : vector<8x128xbf16>, vector<128x128xbf16>, vector<8x128xf32> -> vector<8x128xf32>
    %c0_9 = arith.constant 0 : index
    %c0_10 = arith.constant 0 : index
    %12 = vector.load %arg5[%c0_9, %c0_10] : memref<1x128xf32, #tpu.memory_space<vmem>>, vector<1x128xf32>
    %13 = vector.broadcast %12 : vector<1x128xf32> to vector<8x128xf32>
    %14 = arith.addf %11, %13 : vector<8x128xf32>
    %cst_11 = arith.constant dense<0xFF800000> : vector<8xf32>
    %15 = vector.multi_reduction <maximumf>, %14, %cst_11 [1] : vector<8x128xf32> to vector<8xf32>
    %16 = vector.shape_cast %15 : vector<8xf32> to vector<8x1xf32>
    %17 = vector.broadcast %16 : vector<8x1xf32> to vector<8x128xf32>
    %18 = arith.subf %14, %17 : vector<8x128xf32>
    %19 = math.exp %18 : vector<8x128xf32>
    %cst_12 = arith.constant dense<0.000000e+00> : vector<8xf32>
    %20 = vector.multi_reduction <add>, %19, %cst_12 [1] : vector<8x128xf32> to vector<8xf32>
    %21 = vector.shape_cast %20 : vector<8xf32> to vector<8x1xf32>
    %22 = tpu.reciprocal %21 {approx = true} : vector<8x1xf32> -> vector<8x1xf32>
    %23 = vector.broadcast %22 : vector<8x1xf32> to vector<8x128xf32>
    %24 = arith.mulf %19, %23 : vector<8x128xf32>
    %c0_13 = arith.constant 0 : index
    %c0_14 = arith.constant 0 : index
    %25 = vector.load %arg6[%c0_13, %c0_14] : memref<8x128xf32, #tpu.memory_space<vmem>>, vector<8x128xf32>
    tpu.vector_store %arg6[%c0_13, %c0_14], %24 {strides = array<i32>} : memref<8x128xf32, #tpu.memory_space<vmem>>, vector<8x128xf32>,
    return
  }
  func.func @transform_0(%arg0: i32) -> (i32, i32) {
    %c0_i32 = arith.constant 0 : i32
    %c0_i32_0 = arith.constant 0 : i32
    return %arg0, %c0_i32 : i32, i32
  }
  func.func @transform_1(%arg0: i32) -> (i32, i32) {
    %c0_i32 = arith.constant 0 : i32
    %c0_i32_0 = arith.constant 0 : i32
    %c0_i32_1 = arith.constant 0 : i32
    return %c0_i32, %c0_i32_0 : i32, i32
  }
  func.func @transform_2(%arg0: i32) -> (i32, i32) {
    %c0_i32 = arith.constant 0 : i32
    %c0_i32_0 = arith.constant 0 : i32
    %c0_i32_1 = arith.constant 0 : i32
    return %c0_i32, %c0_i32_0 : i32, i32
  }
  func.func @transform_3(%arg0: i32) -> (i32, i32) {
    %c0_i32 = arith.constant 0 : i32
    %c0_i32_0 = arith.constant 0 : i32
    %c0_i32_1 = arith.constant 0 : i32
    return %c0_i32, %c0_i32_0 : i32, i32
  }
  func.func @transform_4(%arg0: i32) -> (i32, i32) {
    %c0_i32 = arith.constant 0 : i32
    %c0_i32_0 = arith.constant 0 : i32
    %c0_i32_1 = arith.constant 0 : i32
    return %c0_i32, %c0_i32_0 : i32, i32
  }
  func.func @transform_5(%arg0: i32) -> (i32, i32) {
    %c0_i32 = arith.constant 0 : i32
    %c0_i32_0 = arith.constant 0 : i32
    return %arg0, %c0_i32 : i32, i32
  }
}

</mosaic_0001>

<bundles_post_ra>
// kernel: tpu_custom_call.1
= control target key start
LH: loop header
LB: loop body
LE: loop exit
PB: predicated region body
PF: predicated region fallthrough
CT: control target
= control target key end

     0   :  { %10 = vsyncpa [#allocation3], 0  ;;  %s1392_s0 = inlined_call_operand.hbm [shape: f32[2,1024], index: 0, kind: input, shape index: {}]   ;;  %s1393_s1 = inlined_call_operand.hbm [shape: bf16[1024,128], index: 1, kind: input, shape index: {}]   ;;  %s1394_s2 = inlined_call_operand.vmem [shape: f32[1,128], index: 2, kind: input, shape index: {}]   ;;  %s1395_s3 = inlined_call_operand.hbm [shape: bf16[128,128], index: 3, kind: input, shape index: {}]   ;;  %s1396_s4 = inlined_call_operand.vmem [shape: f32[1,128], index: 4, kind: input, shape index: {}]   ;;  %s1397_s5 = inlined_call_operand.hbm [shape: f32[2,128], index: 5, kind: output, shape index: {}]  }
   0x1   :  { %11 = vsyncpa [#allocation6], 0 }
   0x2   :  { %12 = vsyncpa [#allocation4], 0  ;;  %s30_s20 = sshll.u32 %s1393_s1, 4  ;;  %s31_s20 = int_to_ptr.hbm [resolvable:$true] %s30_s20 }
   0x3   :  { %16 = vsyncadd [#allocation3], 768  ;;  %s1334_s21 = smov [#allocation5]   ;;  %s17_s25 = sshll.u32 %s1392_s0, 4  ;;  %s18_s25 = int_to_ptr.hbm [resolvable:$true] %s17_s25 }
   0x4   :  { %s32_s22 = sshll.u32 %s1334_s21, 4  ;;  %s1335_s26 = smov 64   ;;  %s33_s22 = int_to_ptr.vmem [resolvable:$true] %s32_s22 }
   0x5   :  { %s1336_s27 = smov 4   ;;  %s1337_s28 = smov [#allocation2]  }
   0x6   :  { %38 = dma.hbm_to_vmem [thread:$0]  %s31_s20, 8192, %s33_s22, [#allocation6], %s1335_s26, %s1335_s26, %s1336_s27  }
   0x7   :  { %s19_s29 = sshll.u32 %s1337_s28, 4  ;;  %s1338_s30 = smov 256   ;;  %s20_s29 = int_to_ptr.vmem [resolvable:$true] %s19_s29 }
   0x8   :  { %s1339_s6 = smov 16   ;;  %s45_s8 = sshll.u32 %s1395_s3, 4  ;;  %s46_s8 = int_to_ptr.hbm [resolvable:$true] %s45_s8 }
   0x9   :  { %25 = dma.hbm_to_vmem [thread:$0]  %s18_s25, 256, %s20_s29, [#allocation3], %s1338_s30, %s1338_s30, %s1339_s6  }
   0xa   :  { %s1340_s9 = smov [#allocation7]  }
   0xb   :  { %s47_s10 = sshll.u32 %s1340_s9, 4  ;;  %s48_s10 = int_to_ptr.vmem [resolvable:$true] %s47_s10 }
   0xc   :  { %53 = dma.hbm_to_vmem [thread:$0]  %s46_s8, 1024, %s48_s10, [#allocation6], %s1335_s26, %s1335_s26, %s1336_s27  }
   0xd   :  { %1328 = dma.done.wait [#allocation3], 1024  }
   0xe   :  { %1329 = vsyncadd [#allocation3], 4294966272 }
   0xf   :  { %1330 = dma.done.wait [#allocation6], 9216  }
  0x10   :  { %1331 = vsyncadd [#allocation6], 4294958080  ;;  %v1151_v0 = vld [vmem:[#allocation5 + $0x38] sm:$0xff]  ;;  %v1150_v4 = vld [vmem:[#allocation5 + $0x30] sm:$0xff] }
  0x11   :  { %v1159_v1 = vld [vmem:[#allocation5 + $0x78] sm:$0xff]  ;;  %639 = vmatpush.bf16.msra.mxu0 %v1151_v0  ;;  %v1158_v5 = vld [vmem:[#allocation5 + $0x70] sm:$0xff]  ;;  %v1149_v8 = vld [vmem:[#allocation5 + $0x28] sm:$0xff] }
  0x12   :  { %v1167_v2 = vld [vmem:[#allocation5 + $0xb8] sm:$0xff]  ;;  %652 = vmatpush.bf16.msra.mxu1 %v1159_v1  ;;  %v1166_v6 = vld [vmem:[#allocation5 + $0xb0] sm:$0xff]  ;;  %v1157_v9 = vld [vmem:[#allocation5 + $0x68] sm:$0xff] }
  0x13   :  { %v1175_v3 = vld [vmem:[#allocation5 + $0xf8] sm:$0xff]  ;;  %665 = vmatpush.bf16.msra.mxu2 %v1167_v2  ;;  %v1174_v7 = vld [vmem:[#allocation5 + $0xf0] sm:$0xff]  ;;  %v1165_v10 = vld [vmem:[#allocation5 + $0xa8] sm:$0xff] }
  0x14   :  { %678 = vmatpush.bf16.msra.mxu3 %v1175_v3  ;;  %v1173_v11 = vld [vmem:[#allocation5 + $0xe8] sm:$0xff]  ;;  %v1148_v12 = vld [vmem:[#allocation5 + $0x20] sm:$0xff]  ;;  %v1147_v16 = vld [vmem:[#allocation5 + $0x18] sm:$0xff] }
  0x15   :  { %640 = vmatpush.bf16.msra.mxu0 %v1150_v4  ;;  %v1156_v13 = vld [vmem:[#allocation5 + $0x60] sm:$0xff]  ;;  %v70_v18 = vld [vmem:[#allocation2 + $0x10] sm:$0xff]  ;;  %v1155_v19 = vld [vmem:[#allocation5 + $0x58] sm:$0xff] }
  0x16   :  { %653 = vmatpush.bf16.msra.mxu1 %v1158_v5  ;;  %v1164_v14 = vld [vmem:[#allocation5 + $0xa0] sm:$0xff]  ;;  %v74_v21 = vld [vmem:[#allocation2 + $0x30] sm:$0xff]  ;;  %v1163_v22 = vld [vmem:[#allocation5 + $0x98] sm:$0xff]  ;;  %86 = vst [vmem:[#allocation1 + $0x1] ss:$4 sm:$0xff] %v70_v18 }
  0x17   :  { %666 = vmatpush.bf16.msra.mxu2 %v1166_v6  ;;  %v1172_v15 = vld [vmem:[#allocation5 + $0xe0] sm:$0xff]  ;;  %v1171_v23 = vld [vmem:[#allocation5 + $0xd8] sm:$0xff]  ;;  %90 = vst [vmem:[#allocation1 + $0x3] ss:$4 sm:$0xff] %v74_v21  ;;  %v1146_v24 = vld [vmem:[#allocation5 + $0x10] sm:$0xff] }
  0x18   :  { %679 = vmatpush.bf16.msra.mxu3 %v1174_v7  ;;  %v68_v17 = vld [vmem:[#allocation2] sm:$0xff]  ;;  %v1154_v25 = vld [vmem:[#allocation5 + $0x50] sm:$0xff]  ;;  %v69_v28 = vld [vmem:[#allocation2 + $0x8] sm:$0xff] }
  0x19   :  { %641 = vmatpush.bf16.msra.mxu0 %v1149_v8  ;;  %v72_v20 = vld [vmem:[#allocation2 + $0x20] sm:$0xff]  ;;  %84 = vst [vmem:[#allocation1] ss:$4 sm:$0xff] %v68_v17  ;;  %v1162_v26 = vld [vmem:[#allocation5 + $0x90] sm:$0xff]  ;;  %v71_v29 = vld [vmem:[#allocation2 + $0x18] sm:$0xff] }
  0x1a   :  { %654 = vmatpush.bf16.msra.mxu1 %v1157_v9  ;;  %88 = vst [vmem:[#allocation1 + $0x2] ss:$4 sm:$0xff] %v72_v20  ;;  %v1170_v27 = vld [vmem:[#allocation5 + $0xd0] sm:$0xff]  ;;  %v1145_v30 = vld [vmem:[#allocation5 + $0x8] sm:$0xff]  ;;  %v1144_v35 = vld [vmem:[#allocation5] sm:$0xff] }
  0x1b   :  { %667 = vmatpush.bf16.msra.mxu2 %v1165_v10  ;;  %v1153_v31 = vld [vmem:[#allocation5 + $0x48] sm:$0xff]  ;;  %92 = vst [vmem:[#allocation1 + $0x20] ss:$4 sm:$0xff] %v69_v28  ;;  %v75_v36 = vld [vmem:[#allocation2 + $0x38] sm:$0xff]  ;;  %v1152_v37 = vld [vmem:[#allocation5 + $0x40] sm:$0xff] }
  0x1c   :  { %680 = vmatpush.bf16.msra.mxu3 %v1173_v11  ;;  %v1161_v32 = vld [vmem:[#allocation5 + $0x88] sm:$0xff]  ;;  %94 = vst [vmem:[#allocation1 + $0x21] ss:$4 sm:$0xff] %v71_v29  ;;  %v1160_v38 = vld [vmem:[#allocation5 + $0x80] sm:$0xff]  ;;  %v1183_v40 = vld [vmem:[#allocation5 + $0x138] sm:$0xff] }
  0x1d   :  { %642 = vmatpush.bf16.msra.mxu0 %v1148_v12  ;;  %v1169_v33 = vld [vmem:[#allocation5 + $0xc8] sm:$0xff]  ;;  %v1168_v39 = vld [vmem:[#allocation5 + $0xc0] sm:$0xff]  ;;  %v1191_v42 = vld [vmem:[#allocation5 + $0x178] sm:$0xff]  ;;  %98 = vst [vmem:[#allocation1 + $0x23] ss:$4 sm:$0xff] %v75_v36 }
  0x1e   :  { %655 = vmatpush.bf16.msra.mxu1 %v1156_v13  ;;  %v73_v34 = vld [vmem:[#allocation2 + $0x28] sm:$0xff]  ;;  %v1199_v46 = vld [vmem:[#allocation5 + $0x1b8] sm:$0xff]  ;;  %v1182_v52 = vld [vmem:[#allocation5 + $0x130] sm:$0xff] }
  0x1f   :  { %668 = vmatpush.bf16.msra.mxu2 %v1164_v14  ;;  %96 = vst [vmem:[#allocation1 + $0x22] ss:$4 sm:$0xff] %v73_v34  ;;  %v1207_v47 = vld [vmem:[#allocation5 + $0x1f8] sm:$0xff]  ;;  %v1190_v53 = vld [vmem:[#allocation5 + $0x170] sm:$0xff]  ;;  %v1181_v56 = vld [vmem:[#allocation5 + $0x128] sm:$0xff] }
  0x20   :  { %681 = vmatpush.bf16.msra.mxu3 %v1172_v15  ;;  %v1198_v54 = vld [vmem:[#allocation5 + $0x1b0] sm:$0xff]  ;;  %v1189_v57 = vld [vmem:[#allocation5 + $0x168] sm:$0xff]  ;;  %v1180_v60 = vld [vmem:[#allocation5 + $0x120] sm:$0xff] }
  0x21   :  { %643 = vmatpush.bf16.msra.mxu0 %v1147_v16  ;;  %v101_v41 = vld.sshfl [vmem:[#allocation1 + $0x10] sm:$0xff pattern:$0x73625140]  ;;  %v99_v43 = vld.sshfl [vmem:[#allocation1] sm:$0xff pattern:$0x73625140] }
  0x22   :  { %656 = vmatpush.bf16.msra.mxu1 %v1155_v19  ;;  %v102_v44 = vld.sshfl [vmem:[#allocation1 + $0x18] sm:$0xff pattern:$0x73625140]  ;;  %v100_v45 = vld.sshfl [vmem:[#allocation1 + $0x8] sm:$0xff pattern:$0x73625140]  ;;  %v117_v48 = vpack.c.bf16 %v101_v41, %v101_v41  ;;  %v115_v49 = vpack.c.bf16 %v99_v43, %v99_v43 }
  0x23   :  { %669 = vmatpush.bf16.msra.mxu2 %v1163_v22  ;;  %v118_v50 = vpack.c.bf16 %v102_v44, %v102_v44  ;;  %v116_v51 = vpack.c.bf16 %v100_v45, %v100_v45  ;;  %v1206_v55 = vld [vmem:[#allocation5 + $0x1f0] sm:$0xff]  ;;  %v1197_v58 = vld [vmem:[#allocation5 + $0x1a8] sm:$0xff]  ;;  %v1188_v61 = vld [vmem:[#allocation5 + $0x160] sm:$0xff] }
  0x24   :  { %682 = vmatpush.bf16.msra.mxu3 %v1171_v23  ;;  %v1205_v59 = vld [vmem:[#allocation5 + $0x1e8] sm:$0xff]  ;;  %v1196_v62 = vld [vmem:[#allocation5 + $0x1a0] sm:$0xff]  ;;  %v1179_v0 = vld [vmem:[#allocation5 + $0x118] sm:$0xff] }
  0x25   :  { %644 = vmatpush.bf16.msra.mxu0 %v1146_v24  ;;  %v1204_v63 = vld [vmem:[#allocation5 + $0x1e0] sm:$0xff]  ;;  %v1187_v1 = vld [vmem:[#allocation5 + $0x158] sm:$0xff]  ;;  %v1178_v4 = vld [vmem:[#allocation5 + $0x110] sm:$0xff] }
  0x26   :  { %657 = vmatpush.bf16.msra.mxu1 %v1154_v25  ;;  %v1195_v2 = vld [vmem:[#allocation5 + $0x198] sm:$0xff]  ;;  %v1186_v5 = vld [vmem:[#allocation5 + $0x150] sm:$0xff]  ;;  %v1177_v8 = vld [vmem:[#allocation5 + $0x108] sm:$0xff] }
  0x27   :  { %670 = vmatpush.bf16.msra.mxu2 %v1162_v26  ;;  %v1203_v3 = vld [vmem:[#allocation5 + $0x1d8] sm:$0xff]  ;;  %v1194_v6 = vld [vmem:[#allocation5 + $0x190] sm:$0xff]  ;;  %v1185_v9 = vld [vmem:[#allocation5 + $0x148] sm:$0xff] }
  0x28   :  { %683 = vmatpush.bf16.msra.mxu3 %v1170_v27  ;;  %v1202_v7 = vld [vmem:[#allocation5 + $0x1d0] sm:$0xff]  ;;  %v1193_v10 = vld [vmem:[#allocation5 + $0x188] sm:$0xff]  ;;  %v1176_v12 = vld [vmem:[#allocation5 + $0x100] sm:$0xff] }
  0x29   :  { %645 = vmatpush.bf16.msra.mxu0 %v1145_v30  ;;  %v1201_v11 = vld [vmem:[#allocation5 + $0x1c8] sm:$0xff]  ;;  %v1184_v13 = vld [vmem:[#allocation5 + $0x140] sm:$0xff]  ;;  %v103_v16 = vld.sshfl [vmem:[#allocation1 + $0x20] sm:$0xff pattern:$0x73625140] }
  0x2a   :  { %658 = vmatpush.bf16.msra.mxu1 %v1153_v31  ;;  %v1192_v14 = vld [vmem:[#allocation5 + $0x180] sm:$0xff]  ;;  %v105_v18 = vld.sshfl [vmem:[#allocation1 + $0x30] sm:$0xff pattern:$0x73625140]  ;;  %v119_v20 = vpack.c.bf16 %v103_v16, %v103_v16  ;;  %v1215_v24 = vld [vmem:[#allocation7 + $0x38] sm:$0xff] }
  0x2b   :  { %671 = vmatpush.bf16.msra.mxu2 %v1161_v32  ;;  %v1200_v15 = vld [vmem:[#allocation5 + $0x1c0] sm:$0xff]  ;;  %v106_v19 = vld.sshfl [vmem:[#allocation1 + $0x38] sm:$0xff pattern:$0x73625140]  ;;  %v121_v22 = vpack.c.bf16 %v105_v18, %v105_v18  ;;  %v1213_v26 = vld [vmem:[#allocation7 + $0x28] sm:$0xff] }
  0x2c   :  { %684 = vmatpush.bf16.msra.mxu3 %v1169_v33  ;;  %v104_v17 = vld.sshfl [vmem:[#allocation1 + $0x28] sm:$0xff pattern:$0x73625140]  ;;  %v122_v23 = vpack.c.bf16 %v106_v19, %v106_v19  ;;  %v1214_v25 = vld [vmem:[#allocation7 + $0x30] sm:$0xff]  ;;  %v1211_v28 = vld [vmem:[#allocation7 + $0x18] sm:$0xff] }
  0x2d   :  { %646 = vmatpush.bf16.msra.mxu0 %v1144_v35  ;;  %v120_v21 = vpack.c.bf16 %v104_v17, %v104_v17  ;;  %v1212_v27 = vld [vmem:[#allocation7 + $0x20] sm:$0xff]  ;;  %v1210_v30 = vld [vmem:[#allocation7 + $0x10] sm:$0xff]  ;;  %v1209_v32 = vld [vmem:[#allocation7 + $0x8] sm:$0xff] }
  0x2e   :  { %659 = vmatpush.bf16.msra.mxu1 %v1152_v37  ;;  %v1208_v36 = vld [vmem:[#allocation7] sm:$0xff] }
  0x2f   :  { %672 = vmatpush.bf16.msra.mxu2 %v1160_v38  ;;  %v1226_v38 = vld [vmem:[%s1394_s2] ss:$0 sm:$0xff] }
  0x30   :  { %685 = vmatpush.bf16.msra.mxu3 %v1168_v39  ;;  %647 = vmatmul.bf16.vlgmr.msra.gmra.mxu0 %v115_v49 }
  0x31   :  { %691 = vmatpush.bf16.msrb.mxu0 %v1183_v40  ;;  %660 = vmatmul.bf16.vlgmr.msra.gmra.mxu1 %v116_v51 }
  0x32   :  { %704 = vmatpush.bf16.msrb.mxu1 %v1191_v42  ;;  %673 = vmatmul.bf16.vlgmr.msra.gmra.mxu2 %v117_v48 }
  0x33   :  { %717 = vmatpush.bf16.msrb.mxu2 %v1199_v46  ;;  %686 = vmatmul.bf16.vlgmr.msra.gmra.mxu3 %v118_v50 }
  0x34   :  { %730 = vmatpush.bf16.msrb.mxu3 %v1207_v47 }
  0x35   :  { %692 = vmatpush.bf16.msrb.mxu0 %v1182_v52 }
  0x36   :  { %705 = vmatpush.bf16.msrb.mxu1 %v1190_v53 }
  0x37   :  { %718 = vmatpush.bf16.msrb.mxu2 %v1198_v54 }
  0x38   :  { %731 = vmatpush.bf16.msrb.mxu3 %v1206_v55 }
  0x39   :  { %693 = vmatpush.bf16.msrb.mxu0 %v1181_v56 }
  0x3a   :  { %706 = vmatpush.bf16.msrb.mxu1 %v1189_v57 }
  0x3b   :  { %719 = vmatpush.bf16.msrb.mxu2 %v1197_v58 }
  0x3c   :  { %732 = vmatpush.bf16.msrb.mxu3 %v1205_v59  ;;  %v1227_v59 = vld [vmem:[%s1396_s4] ss:$0 sm:$0xff] }
  0x3d   :  { %694 = vmatpush.bf16.msrb.mxu0 %v1180_v60 }
  0x3e   :  { %707 = vmatpush.bf16.msrb.mxu1 %v1188_v61 }
  0x3f   :  { %720 = vmatpush.bf16.msrb.mxu2 %v1196_v62 }
  0x40   :  { %733 = vmatpush.bf16.msrb.mxu3 %v1204_v63 }
  0x41   :  { %695 = vmatpush.bf16.msrb.mxu0 %v1179_v0 }
  0x42   :  { %708 = vmatpush.bf16.msrb.mxu1 %v1187_v1 }
  0x43   :  { %721 = vmatpush.bf16.msrb.mxu2 %v1195_v2 }
  0x44   :  { %734 = vmatpush.bf16.msrb.mxu3 %v1203_v3 }
  0x45   :  { %696 = vmatpush.bf16.msrb.mxu0 %v1178_v4 }
  0x46   :  { %709 = vmatpush.bf16.msrb.mxu1 %v1186_v5 }
  0x47   :  { %722 = vmatpush.bf16.msrb.mxu2 %v1194_v6 }
  0x48   :  { %735 = vmatpush.bf16.msrb.mxu3 %v1202_v7 }
  0x49   :  { %697 = vmatpush.bf16.msrb.mxu0 %v1177_v8 }
  0x4a   :  { %710 = vmatpush.bf16.msrb.mxu1 %v1185_v9 }
  0x4b   :  { %723 = vmatpush.bf16.msrb.mxu2 %v1193_v10 }
  0x4c   :  { %736 = vmatpush.bf16.msrb.mxu3 %v1201_v11 }
  0x4d   :  { %698 = vmatpush.bf16.msrb.mxu0 %v1176_v12 }
  0x4e   :  { %711 = vmatpush.bf16.msrb.mxu1 %v1184_v13 }
  0x4f   :  { %724 = vmatpush.bf16.msrb.mxu2 %v1192_v14 }
  0x50   :  { %737 = vmatpush.bf16.msrb.mxu3 %v1200_v15  ;;  %699 = vmatmul.bf16.vlgmr.msrb.gmra.mxu0 %v119_v20 }
  0x51   :  { %712 = vmatmul.bf16.vlgmr.msrb.gmra.mxu1 %v120_v21  ;;  %813 = vmatpush.bf16.msra.mxu0 %v1215_v24 }
  0x52   :  { %725 = vmatmul.bf16.vlgmr.msrb.gmra.mxu2 %v121_v22 }
  0x53   :  { %738 = vmatmul.bf16.vlgmr.msrb.gmra.mxu3 %v122_v23 }
  0x55   :  { %814 = vmatpush.bf16.msra.mxu0 %v1214_v25 }
  0x59   :  { %815 = vmatpush.bf16.msra.mxu0 %v1213_v26 }
  0x5d   :  { %816 = vmatpush.bf16.msra.mxu0 %v1212_v27 }
  0x61   :  { %817 = vmatpush.bf16.msra.mxu0 %v1211_v28 }
  0x65   :  { %818 = vmatpush.bf16.msra.mxu0 %v1210_v30 }
  0x69   :  { %819 = vmatpush.bf16.msra.mxu0 %v1209_v32 }
  0x6d   :  { %820 = vmatpush.bf16.msra.mxu0 %v1208_v36 }
  0xad   :  { %v648_v29 = vpop.f32.mrf.mxu0 }
  0xae   :  { %v661_v31 = vpop.f32.mrf.mxu1  ;;  %v649_v41 = vadd.f32 %v1226_v38, %v648_v29 }
  0xb0   :  { %v662_v42 = vadd.f32 %v661_v31, %v649_v41 }
  0xb5   :  { %v674_v33 = vpop.f32.mrf.mxu2  ;;  %v650_v35 = vpop.f32.mrf.mxu0 }
  0xb6   :  { %v687_v34 = vpop.f32.mrf.mxu3  ;;  %v663_v37 = vpop.f32.mrf.mxu1  ;;  %v675_v43 = vadd.f32 %v674_v33, %v662_v42 }
  0xb8   :  { %v688_v44 = vadd.f32 %v687_v34, %v675_v43 }
  0xbd   :  { %v676_v39 = vpop.f32.mrf.mxu2 }
  0xbe   :  { %v689_v40 = vpop.f32.mrf.mxu3 }
  0xcd   :  { %v700_v45 = vpop.f32.mrf.mxu0 }
  0xce   :  { %v713_v46 = vpop.f32.mrf.mxu1  ;;  %v701_v47 = vadd.f32 %v700_v45, %v688_v44 }
  0xd0   :  { %v714_v48 = vadd.f32 %v713_v46, %v701_v47 }
  0xd5   :  { %v726_v49 = vpop.f32.mrf.mxu2  ;;  %v702_v52 = vpop.f32.mrf.mxu0 }
  0xd6   :  { %v739_v50 = vpop.f32.mrf.mxu3  ;;  %v727_v51 = vadd.f32 %v726_v49, %v714_v48  ;;  %v715_v53 = vpop.f32.mrf.mxu1 }
  0xd8   :  { %v740_v54 = vadd.f32 %v739_v50, %v727_v51 }
  0xda   :  { %v743_v55 = vmax.f32 %v740_v54, 0.0 }
  0xdc   :  { %v744_v56 = vpack.c.bf16 %v743_v55, %v743_v55 }
  0xdd   :  { %v728_v57 = vpop.f32.mrf.mxu2 }
  0xde   :  { %v741_v58 = vpop.f32.mrf.mxu3  ;;  %821 = vmatmul.bf16.vlgmr.msra.gmra.mxu0 %v744_v56 }
 0x15b   :  { %v822_v60 = vpop.f32.mrf.mxu0 }
 0x15c   :  { %v823_v61 = vadd.f32 %v1227_v59, %v822_v60 }
 0x15e   :  { %826 = vmax.xlane.f32.xlu0 %v823_v61 }
 0x163   :  { %v824_v62 = vpop.f32.mrf.mxu0 }
 0x1d1   :  { %v827_v63 = vpop.xlane.xlu0 %826 }
 0x1d2   :  { %v828_v0 = vsub.f32 %v823_v61, %v827_v63 }
 0x1d4   :  { %v829_v1 = vmul.f32 1.442695, %v828_v0 }
 0x1d6   :  { %1228 = vpow2.f32 %v829_v1 }
 0x1dc   :  { %v1229_v2 = vpop.eup %1228 }
 0x1dd   :  { %831 = vadd.xlane.f32.xlu0 %v1229_v2 }
 0x250   :  { %v832_v3 = vpop.xlane.xlu0 %831 }
 0x251   :  { %1230 = vrcp.f32 %v832_v3 }
 0x257   :  { %v1231_v4 = vpop.eup %1230 }
 0x258   :  { %v834_v5 = vmul.f32 %v1231_v4, %v1229_v2 }
 0x25a   :  { %835 = vst [vmem:[#allocation8] sm:$0xff] %v834_v5 }
 0x25b   :  { %839 = vsyncadd [#allocation4], 96  ;;  %s842_s4 = sshll.u32 %s1397_s5, 4  ;;  %s1341_s14 = smov [#allocation8]   ;;  %s843_s4 = int_to_ptr.hbm [resolvable:$true] %s842_s4 }
 0x25c   :  { %s840_s15 = sshll.u32 %s1341_s14, 4  ;;  %s1342_s16 = smov 32   ;;  %s841_s15 = int_to_ptr.vmem [resolvable:$true] %s840_s15 }
 0x25d   :  { %s1343_s17 = smov 2  }
 0x25e   :  { %848 = dma.vmem_to_hbm [thread:$0]  %s841_s15, 32, %s843_s4, [#allocation4], %s1342_s16, %s1342_s16, %s1343_s17  }
 0x25f   :  { %1332 = dma.done.wait [#allocation4], 128  }
 0x260   :  { %1333 = vsyncadd [#allocation4], 4294967168 }
 0x261   :  { %853 = vsyncpa [#allocation3], 1 }
 0x262   :  { %854 = vsyncpa [#allocation6], 1 }
 0x263   :  { %855 = vsyncpa [#allocation4], 1 }

</bundles_post_ra>
